<compile_context>
chip_gen: v7x
topology: tpu7x:2x2x1
jax: 0.10.0
libtpu: 0.0.40
codegen_flags: <defaults>
</compile_context>

<pallas_src>
import functools
import math

import jax
import jax.numpy as jnp
from jax.experimental import pallas as pl
from jax.experimental.pallas import tpu as pltpu


_INV_SQRT2 = 0.7071067811865476
_LANE = 128
_SUBLANE = 8


def _round_up(x, m):
    return ((x + m - 1) // m) * m


def _gelu_exact(x):
    # torch.nn.GELU() default = exact erf formulation (reference only).
    return 0.5 * x * (1.0 + jax.lax.erf(x * _INV_SQRT2))


def _make_kernel(num_layers):
    """Kernel for the fused (block-diagonal) MLP with `num_layers` layers."""

    def kernel(x_ref, *refs):
        # refs = (W_0, b_0, W_1, b_1, ..., W_{L-1}, b_{L-1}, o_ref)
        o_ref = refs[-1]
        p = refs[:-1]

        h = x_ref[...].astype(jnp.float32)  # [TB, M_pad]
        for l in range(num_layers):
            w_ref = p[2 * l]       # [in_f, out_f]  (f32 for l==0, bf16 after)
            b_ref = p[2 * l + 1]   # [1, out_f]     (f32)
            # Operand dtype pins MXU precision: bf16 x bf16 -> f32 accumulate
            # for hidden/final layers; f32 x f32 for the tiny first layer.
            h = jnp.dot(h.astype(w_ref.dtype), w_ref[...],
                        preferred_element_type=jnp.float32) + b_ref[...]
            if l < num_layers - 1:
                # tanh-approximate GELU -> transcendental lands on the EUP
                # slot instead of an erf polynomial on the VALU.
                h = jax.nn.gelu(h, approximate=True)
        # Single store of the fused [TB, N] result.
        o_ref[...] = h.astype(o_ref.dtype)

    return kernel


def init_params(planes, key):
    """Xavier-uniform weights / zero biases, stacked over the N branches.

    Matches the torch module + initialize_weights (bias.zero_()): per-branch
    layers planes[0]->...->planes[-2]->1.  Returns list of
    (W [N, in, out], b [N, 1, out]) per layer.
    """
    n_out = planes[-1]
    dims = list(planes[:-1]) + [1]
    params = []
    for l in range(len(dims) - 1):
        fan_in, fan_out = dims[l], dims[l + 1]
        bound = math.sqrt(6.0 / (fan_in + fan_out))
        key, sub = jax.random.split(key)
        w = jax.random.uniform(
            sub, (n_out, fan_in, fan_out), minval=-bound, maxval=bound,
            dtype=jnp.float32)
        b = jnp.zeros((n_out, 1, fan_out), dtype=jnp.float32)
        params.append((w, b))
    return params


def pack_branch_params(params, lane_pad=_LANE, matmul_dtype=jnp.bfloat16):
    """Pack per-branch params into fused (block-diagonal) layer matrices.

    Layer 0 (shared input x): W_f[:, j*H:(j+1)*H] = W_j           -> [M_pad, N*H]
    Hidden layer l:           block (j, j) = W_j                  -> [N*H, N*H]
    Final layer:              block rows j, column j = W_j        -> [N*H, N]
    Fused hidden widths are zero-padded to a multiple of `lane_pad` (128
    lanes); layer-0 input rows are zero-padded to a sublane multiple (8).
    Padding is exact (GELU(0)=0, zero weight rows/cols contribute 0).
    Hidden/final weights are stored in bf16 (MXU-native); layer 0 and all
    biases stay f32.  Done once per set of weights, NOT per forward call.
    """
    num_layers = len(params)
    n = params[0][0].shape[0]
    packed = []
    for l, (w, b) in enumerate(params):
        _, fin, fout = w.shape
        out_f = n * fout
        out_fp = _round_up(out_f, lane_pad) if l < num_layers - 1 else out_f
        if l == 0:
            in_fp = _round_up(fin, _SUBLANE)
            wp = jnp.zeros((in_fp, out_fp), jnp.float32)
            for j in range(n):
                wp = wp.at[:fin, j * fout:(j + 1) * fout].set(w[j])
            wp = wp.astype(jnp.float32)          # keep input precision, K tiny
        else:
            in_fp = _round_up(n * fin, lane_pad)
            wp = jnp.zeros((in_fp, out_fp), jnp.float32)
            for j in range(n):
                wp = wp.at[j * fin:(j + 1) * fin,
                           j * fout:(j + 1) * fout].set(w[j])
            wp = wp.astype(matmul_dtype)         # bf16 MXU operands
        bp = jnp.zeros((1, out_fp), jnp.float32)
        for j in range(n):
            bp = bp.at[:, j * fout:(j + 1) * fout].set(b[j, 0])
        packed.append((wp, bp))
    return packed


@functools.partial(jax.jit, static_argnames=("planes", "tile_b"))
def deep_model_multi_forward(x, packed_params, *, planes, tile_b=2048):
    """x: [B, M] float32 -> [B, N] float32 (N = planes[-1])."""
    B, M = x.shape
    n_out = planes[-1]
    num_layers = len(planes) - 1            # hidden layers + final Linear(.,1)
    m_pad = _round_up(M, _SUBLANE)          # sublane-aligned input features

    # Cap the batch tile at ceil(B/2) (rounded to 8) so the grid has >= 2
    # steps whenever B > 8 -> the "parallel" axis shards across both
    # TensorCores on v7x.  Large tiles otherwise amortize per-step overhead.
    tb = min(tile_b, _round_up(max((B + 1) // 2, _SUBLANE), _SUBLANE))
    Bp = _round_up(B, tb)
    pad_rows, pad_cols = Bp - B, m_pad - M
    if pad_rows or pad_cols:
        x = jnp.pad(x, ((0, pad_rows), (0, pad_cols)))

    kernel = _make_kernel(num_layers)

    in_specs = [pl.BlockSpec((tb, m_pad), lambda i: (i, 0))]
    flat_inputs = [x]
    for (w, b) in packed_params:
        # Weights/biases are tiny and grid-invariant (constant index_map),
        # so they stay resident in VMEM across grid steps.
        in_specs.append(pl.BlockSpec(w.shape, lambda i: (0, 0)))
        in_specs.append(pl.BlockSpec(b.shape, lambda i: (0, 0)))
        flat_inputs.append(w)
        flat_inputs.append(b)

    out = pl.pallas_call(
        kernel,
        out_shape=jax.ShapeDtypeStruct((Bp, n_out), jnp.float32),
        grid_spec=pltpu.PrefetchScalarGridSpec(
            num_scalar_prefetch=0,
            grid=(Bp // tb,),
            in_specs=in_specs,
            out_specs=pl.BlockSpec((tb, n_out), lambda i: (i, 0)),
        ),
        compiler_params=pltpu.CompilerParams(
            dimension_semantics=("parallel",),
            vmem_limit_bytes=32 * 1024 * 1024,  # > v5e's 16 MiB scoped default
        ),
    )(*flat_inputs)
    return out[:B]


def _reference_forward_exact(x, params):
    """Pure-JAX reference of the PyTorch forward (per-branch, f32, exact GELU)."""
    cols = []
    n_out = params[0][0].shape[0]
    num_layers = len(params)
    for j in range(n_out):
        h = x
        for l, (w, b) in enumerate(params):
            h = h @ w[j] + b[j]
            if l < num_layers - 1:
                h = _gelu_exact(h)
        cols.append(h)
    return jnp.concatenate(cols, axis=-1)


def _reference_forward_packed(x, packed):
    """Pure-JAX reference matching the kernel's numerics (bf16 + tanh GELU)."""
    m_pad = packed[0][0].shape[0]
    h = jnp.pad(x, ((0, 0), (0, m_pad - x.shape[1]))).astype(jnp.float32)
    num_layers = len(packed)
    for l, (w, b) in enumerate(packed):
        h = jnp.dot(h.astype(w.dtype), w,
                    preferred_element_type=jnp.float32) + b
        if l < num_layers - 1:
            h = jax.nn.gelu(h, approximate=True)
    return h


if __name__ == "__main__":
    # planes = [input_dim, hidden..., n_outputs]  (e.g. (x, y) -> (u, v, p))
    planes = (2, 32, 32, 3)
    B = 16

    key = jax.random.PRNGKey(0)
    key, kx = jax.random.split(key)
    x = jax.random.normal(kx, (B, planes[0]), dtype=jnp.float32)

    params = init_params(planes, key)          # torch-layout stacked params
    packed = pack_branch_params(params)        # fused block-diagonal params

    out = deep_model_multi_forward(x, tuple(packed), planes=planes, tile_b=2048)
    out = jax.block_until_ready(out)
    assert out.shape == (B, planes[-1])

    # Plumbing check: identical math (packing, bf16 matmuls, tanh GELU) in
    # pure JAX must match the Pallas kernel tightly.
    ref_match = _reference_forward_packed(x, packed)
    err_match = float(jnp.max(jnp.abs(out - ref_match)))
    assert jnp.allclose(out, ref_match, atol=1e-3, rtol=1e-3), err_match

    # Semantic check vs. the torch-equivalent per-branch f32/exact-GELU
    # forward; tolerance loosened for bf16 operands + tanh-approximate GELU.
    ref_exact = _reference_forward_exact(x, params)
    err_exact = float(jnp.max(jnp.abs(out - ref_exact)))
    assert jnp.allclose(out, ref_exact, atol=3e-2, rtol=3e-2), err_exact

    print("KERNEL_OK")
</pallas_src>

<mosaic_0001>
module attributes {stable_mosaic.version = 11 : i64} {
  func.func @kernel(%arg0: i32, %arg1: memref<8x8xf32, #tpu.memory_space<vmem>>, %arg2: memref<8x128xf32, #tpu.memory_space<vmem>>, %arg3: memref<1x128xf32, #tpu.memory_space<vmem>>, %arg4: memref<128x128xbf16, #tpu.memory_space<vmem>>, %arg5: memref<1x128xf32, #tpu.memory_space<vmem>>, %arg6: memref<128x3xbf16, #tpu.memory_space<vmem>>, %arg7: memref<1x3xf32, #tpu.memory_space<vmem>>, %arg8: memref<8x3xf32, #tpu.memory_space<vmem>>) attributes {dimension_semantics = [#tpu.dimension_semantics<parallel>], iteration_bounds = array<i64: 2>, scalar_prefetch = 0 : i64, scratch_operands = 0 : i64, tpu.core_type = #tpu.core_type<tc>, window_params = [{transform_indices = @transform_0, window_bounds = array<i64: 8, 8>}, {pipeline_mode = #tpu.pipeline_mode<synchronous>, transform_indices = @transform_1, window_bounds = array<i64: 8, 128>}, {pipeline_mode = #tpu.pipeline_mode<synchronous>, transform_indices = @transform_2, window_bounds = array<i64: 1, 128>}, {pipeline_mode = #tpu.pipeline_mode<synchronous>, transform_indices = @transform_3, window_bounds = array<i64: 128, 128>}, {pipeline_mode = #tpu.pipeline_mode<synchronous>, transform_indices = @transform_4, window_bounds = array<i64: 1, 128>}, {pipeline_mode = #tpu.pipeline_mode<synchronous>, transform_indices = @transform_5, window_bounds = array<i64: 128, 3>}, {pipeline_mode = #tpu.pipeline_mode<synchronous>, transform_indices = @transform_6, window_bounds = array<i64: 1, 3>}, {transform_indices = @transform_7, window_bounds = array<i64: 8, 3>}]} {
    %c0 = arith.constant 0 : index
    %c0_0 = arith.constant 0 : index
    %0 = vector.load %arg1[%c0, %c0_0] : memref<8x8xf32, #tpu.memory_space<vmem>>, vector<8x8xf32>
    %c0_1 = arith.constant 0 : index
    %c0_2 = arith.constant 0 : index
    %1 = vector.load %arg2[%c0_1, %c0_2] : memref<8x128xf32, #tpu.memory_space<vmem>>, vector<8x128xf32>
    %cst = arith.constant dense<0.000000e+00> : vector<8x128xf32>
    %2 = tpu.matmul %0, %1, %cst {dimension_numbers = #tpu.dot_dimension_numbers<[1], [0], [0], [1], [0, 0, 1, 1], [], []>} : vector<8x8xf32>, vector<8x128xf32>, vector<8x128xf32> -> vector<8x128xf32>
    %c0_3 = arith.constant 0 : index
    %c0_4 = arith.constant 0 : index
    %3 = vector.load %arg3[%c0_3, %c0_4] : memref<1x128xf32, #tpu.memory_space<vmem>>, vector<1x128xf32>
    %4 = vector.broadcast %3 : vector<1x128xf32> to vector<8x128xf32>
    %5 = arith.addf %2, %4 : vector<8x128xf32>
    %6 = arith.mulf %5, %5 : vector<8x128xf32>
    %7 = arith.mulf %5, %6 : vector<8x128xf32>
    %cst_5 = arith.constant 4.471500e-02 : f32
    %8 = vector.broadcast %cst_5 : f32 to vector<8x128xf32>
    %9 = arith.mulf %8, %7 : vector<8x128xf32>
    %10 = arith.addf %5, %9 : vector<8x128xf32>
    %cst_6 = arith.constant 0.797884583 : f32
    %11 = vector.broadcast %cst_6 : f32 to vector<8x128xf32>
    %12 = arith.mulf %11, %10 : vector<8x128xf32>
    %13 = math.tanh %12 : vector<8x128xf32>
    %cst_7 = arith.constant 1.000000e+00 : f32
    %14 = vector.broadcast %cst_7 : f32 to vector<8x128xf32>
    %15 = arith.addf %14, %13 : vector<8x128xf32>
    %cst_8 = arith.constant 5.000000e-01 : f32
    %16 = vector.broadcast %cst_8 : f32 to vector<8x128xf32>
    %17 = arith.mulf %16, %15 : vector<8x128xf32>
    %18 = arith.mulf %5, %17 : vector<8x128xf32>
    %19 = arith.truncf %18 : vector<8x128xf32> to vector<8x128xbf16>
    %c0_9 = arith.constant 0 : index
    %c0_10 = arith.constant 0 : index
    %20 = vector.load %arg4[%c0_9, %c0_10] : memref<128x128xbf16, #tpu.memory_space<vmem>>, vector<128x128xbf16>
    %cst_11 = arith.constant dense<0.000000e+00> : vector<8x128xf32>
    %21 = tpu.matmul %19, %20, %cst_11 {dimension_numbers = #tpu.dot_dimension_numbers<[1], [0], [0], [1], [0, 0, 1, 1], [], []>} : vector<8x128xbf16>, vector<128x128xbf16>, vector<8x128xf32> -> vector<8x128xf32>
    %c0_12 = arith.constant 0 : index
    %c0_13 = arith.constant 0 : index
    %22 = vector.load %arg5[%c0_12, %c0_13] : memref<1x128xf32, #tpu.memory_space<vmem>>, vector<1x128xf32>
    %23 = vector.broadcast %22 : vector<1x128xf32> to vector<8x128xf32>
    %24 = arith.addf %21, %23 : vector<8x128xf32>
    %25 = arith.mulf %24, %24 : vector<8x128xf32>
    %26 = arith.mulf %24, %25 : vector<8x128xf32>
    %cst_14 = arith.constant 4.471500e-02 : f32
    %27 = vector.broadcast %cst_14 : f32 to vector<8x128xf32>
    %28 = arith.mulf %27, %26 : vector<8x128xf32>
    %29 = arith.addf %24, %28 : vector<8x128xf32>
    %cst_15 = arith.constant 0.797884583 : f32
    %30 = vector.broadcast %cst_15 : f32 to vector<8x128xf32>
    %31 = arith.mulf %30, %29 : vector<8x128xf32>
    %32 = math.tanh %31 : vector<8x128xf32>
    %cst_16 = arith.constant 1.000000e+00 : f32
    %33 = vector.broadcast %cst_16 : f32 to vector<8x128xf32>
    %34 = arith.addf %33, %32 : vector<8x128xf32>
    %cst_17 = arith.constant 5.000000e-01 : f32
    %35 = vector.broadcast %cst_17 : f32 to vector<8x128xf32>
    %36 = arith.mulf %35, %34 : vector<8x128xf32>
    %37 = arith.mulf %24, %36 : vector<8x128xf32>
    %38 = arith.truncf %37 : vector<8x128xf32> to vector<8x128xbf16>
    %c0_18 = arith.constant 0 : index
    %c0_19 = arith.constant 0 : index
    %39 = vector.load %arg6[%c0_18, %c0_19] : memref<128x3xbf16, #tpu.memory_space<vmem>>, vector<128x3xbf16>
    %cst_20 = arith.constant dense<0.000000e+00> : vector<8x3xf32>
    %40 = tpu.matmul %38, %39, %cst_20 {dimension_numbers = #tpu.dot_dimension_numbers<[1], [0], [0], [1], [0, 0, 1, 1], [], []>} : vector<8x128xbf16>, vector<128x3xbf16>, vector<8x3xf32> -> vector<8x3xf32>
    %c0_21 = arith.constant 0 : index
    %c0_22 = arith.constant 0 : index
    %41 = vector.load %arg7[%c0_21, %c0_22] : memref<1x3xf32, #tpu.memory_space<vmem>>, vector<1x3xf32>
    %42 = vector.broadcast %41 : vector<1x3xf32> to vector<8x3xf32>
    %43 = arith.addf %40, %42 : vector<8x3xf32>
    %c0_23 = arith.constant 0 : index
    %c0_24 = arith.constant 0 : index
    %44 = vector.load %arg8[%c0_23, %c0_24] : memref<8x3xf32, #tpu.memory_space<vmem>>, vector<8x3xf32>
    tpu.vector_store %arg8[%c0_23, %c0_24], %43 {strides = array<i32>} : memref<8x3xf32, #tpu.memory_space<vmem>>, vector<8x3xf32>,
    return
  }
  func.func @transform_0(%arg0: i32) -> (i32, i32) {
    %c0_i32 = arith.constant 0 : i32
    %c0_i32_0 = arith.constant 0 : i32
    return %arg0, %c0_i32 : i32, i32
  }
  func.func @transform_1(%arg0: i32) -> (i32, i32) {
    %c0_i32 = arith.constant 0 : i32
    %c0_i32_0 = arith.constant 0 : i32
    %c0_i32_1 = arith.constant 0 : i32
    return %c0_i32, %c0_i32_0 : i32, i32
  }
  func.func @transform_2(%arg0: i32) -> (i32, i32) {
    %c0_i32 = arith.constant 0 : i32
    %c0_i32_0 = arith.constant 0 : i32
    %c0_i32_1 = arith.constant 0 : i32
    return %c0_i32, %c0_i32_0 : i32, i32
  }
  func.func @transform_3(%arg0: i32) -> (i32, i32) {
    %c0_i32 = arith.constant 0 : i32
    %c0_i32_0 = arith.constant 0 : i32
    %c0_i32_1 = arith.constant 0 : i32
    return %c0_i32, %c0_i32_0 : i32, i32
  }
  func.func @transform_4(%arg0: i32) -> (i32, i32) {
    %c0_i32 = arith.constant 0 : i32
    %c0_i32_0 = arith.constant 0 : i32
    %c0_i32_1 = arith.constant 0 : i32
    return %c0_i32, %c0_i32_0 : i32, i32
  }
  func.func @transform_5(%arg0: i32) -> (i32, i32) {
    %c0_i32 = arith.constant 0 : i32
    %c0_i32_0 = arith.constant 0 : i32
    %c0_i32_1 = arith.constant 0 : i32
    return %c0_i32, %c0_i32_0 : i32, i32
  }
  func.func @transform_6(%arg0: i32) -> (i32, i32) {
    %c0_i32 = arith.constant 0 : i32
    %c0_i32_0 = arith.constant 0 : i32
    %c0_i32_1 = arith.constant 0 : i32
    return %c0_i32, %c0_i32_0 : i32, i32
  }
  func.func @transform_7(%arg0: i32) -> (i32, i32) {
    %c0_i32 = arith.constant 0 : i32
    %c0_i32_0 = arith.constant 0 : i32
    return %arg0, %c0_i32 : i32, i32
  }
}

</mosaic_0001>

<bundles_post_ra>
// kernel: deep_model_multi_forward.1
= control target key start
LH: loop header
LB: loop body
LE: loop exit
PB: predicated region body
PF: predicated region fallthrough
CT: control target
= control target key end

     0   :  { %s829_s24 = smov 0   ;;  %s933_s0 = inlined_call_operand.vmem [shape: f32[16,8], index: 0, kind: input, shape index: {}]   ;;  %s934_s1 = inlined_call_operand.vmem [shape: f32[8,128], index: 1, kind: input, shape index: {}]   ;;  %s935_s2 = inlined_call_operand.vmem [shape: f32[1,128], index: 2, kind: input, shape index: {}]   ;;  %s936_s3 = inlined_call_operand.vmem [shape: bf16[128,128], index: 3, kind: input, shape index: {}]   ;;  %s937_s4 = inlined_call_operand.vmem [shape: f32[1,128], index: 4, kind: input, shape index: {}]   ;;  %s938_s5 = inlined_call_operand.vmem [shape: bf16[128,3], index: 5, kind: input, shape index: {}]   ;;  %s939_s6 = inlined_call_operand.vmem [shape: f32[1,3], index: 6, kind: input, shape index: {}]   ;;  %s940_s7 = inlined_call_operand.vmem [shape: f32[16,3], index: 7, kind: output, shape index: {}]  }
   0x1 LB: > { %s655_s25 = sadd.s32 4294967295, %s785_s24   ;;  %p659_p0 = scmp.ge.s32.totalorder %s785_s24, 1  ;;  %s785_s24 = sphi %s829_s24, %s17_s24  }
   0x2   : > { %p236_p1 = scmp.lt.s32.totalorder %s785_s24, 3 }
   0x4   : > { %p237_p2 = pnand %p659_p0, %p236_p1 }
   0x5   : > { %v276_v0 = vld [vmem:[%s934_s1] sm:$0xff] (!%p237_p2)  ;;  %p266_p3 = scmp.lt.s32.totalorder (!%p237_p2), %s655_s25, 1  ;;  %v787_v1 = vmov (!%p237_p2), 0.0   ;;  %vm788_vm0 = vmmov (!%p237_p2), 0   ;;  %vm284_vm1 = vcmask (!%p237_p2), 64512   ;;  %v760_v4 = vld [vmem:[%s936_s3 + $0x8] sm:$0xff] (!%p237_p2)  }
   0x6   : > { %240 = sbr.rel (%p237_p2) target bundleno = 718 (0x2ce), region = 48  ;;  %704 = vmatprep.subr.mxu0 (!%p237_p2), %v787_v1  ;;  %706 = vmatprep.mubr.msk.f32.mxu0 (!%p237_p2), %vm788_vm0, %v787_v1  ;;  %v759_v3 = vld [vmem:[%s936_s3] sm:$0xff] (!%p237_p2)   ;;  %v761_v5 = vld [vmem:[%s936_s3 + $0x10] sm:$0xff] (!%p237_p2)   ;;  %v762_v6 = vld [vmem:[%s936_s3 + $0x18] sm:$0xff] (!%p237_p2)   ;;  %vm600_vm2 = vcmask (!%p237_p2), 23552  }
   0x7   : > { %705 = vmatpush3.msra.mxu0 (!%p237_p2), %v276_v0  ;;  %709 = vmatprep.subr.bf16.mxu1 (!%p237_p2), %v787_v1  ;;  %v763_v7 = vld [vmem:[%s936_s3 + $0x20] sm:$0xff] (!%p237_p2)   ;;  %v764_v8 = vld [vmem:[%s936_s3 + $0x28] sm:$0xff] (!%p237_p2)   ;;  %v765_v9 = vld [vmem:[%s936_s3 + $0x30] sm:$0xff] (!%p237_p2)  }
   0x8   : > { %725 = vmatprep.mubr.msk.bf16.mxu1 (!%p237_p2), %vm788_vm0, %v787_v1  ;;  %729 = vmatprep.subr.bf16.mxu0 (!%p237_p2), %v787_v1  ;;  %v766_v10 = vld [vmem:[%s936_s3 + $0x38] sm:$0xff] (!%p237_p2)   ;;  %v662_v11 = vld [vmem:[%s935_s2] ss:$0 sm:$0xff] (!%p237_p2)  ;;  %v768_v26 = vld [vmem:[%s938_s5 + $0x8] sm:$0xff] (!%p237_p2)  }
   0x9   : > { %710 = vmatpush3.bf16.msra.mxu1 (!%p237_p2), %v759_v3  ;;  %v767_v25 = vld [vmem:[%s938_s5] sm:$0xff] (!%p237_p2)   ;;  %v769_v27 = vld [vmem:[%s938_s5 + $0x10] sm:$0xff] (!%p237_p2)   ;;  %v770_v28 = vld [vmem:[%s938_s5 + $0x18] sm:$0xff] (!%p237_p2)  }
   0xa   : > { %711 = vmatprep.subr.bf16.mxu1 (!%p237_p2), %v787_v1  ;;  %v771_v29 = vld [vmem:[%s938_s5 + $0x20] sm:$0xff] (!%p237_p2)   ;;  %v772_v30 = vld [vmem:[%s938_s5 + $0x28] sm:$0xff] (!%p237_p2)   ;;  %v773_v31 = vld [vmem:[%s938_s5 + $0x30] sm:$0xff] (!%p237_p2)  }
   0xb   : > { %v774_v32 = vld [vmem:[%s938_s5 + $0x38] sm:$0xff] (!%p237_p2)   ;;  %v664_v33 = vld [vmem:[%s937_s4] ss:$0 sm:$0xff] (!%p237_p2) }
   0xc   : > { %v673_v49 = vld [vmem:[%s939_s6] ss:$0 sm:$0xff] (!%p237_p2) }
   0xd   : > { %s942_s25 = smov (!%p266_p3, %s655_s25), 1  ;;  %712 = vmatpush3.bf16.msra.mxu1 %v760_v4 }
   0xe   : > { %s660_s28 = sshll.u32 %s942_s25, 3  ;;  %713 = vmatprep.subr.bf16.mxu1 %v787_v1 }
   0xf   : > { %s269_s8 = scalar_lea.vmem %s933_s0, %s660_s28  ;;  %s273_s9 = scalar_lea.vmem %s940_s7, %s660_s28 }
  0x10   : > { %v275_v2 = vld [vmem:[%s269_s8] sm:$0xff] }
  0x11   : > { %707 = vmatmul.mubr.msk.f32.vlgmr.msra.gmra.mrb[0].mxu0 %vm284_vm1, %v275_v2  ;;  %714 = vmatpush3.bf16.msra.mxu1 %v761_v5 }
  0x12   : > { %745 = vmatprep.mubr.msk.bf16.mxu0 %vm788_vm0, %v787_v1  ;;  %715 = vmatprep.subr.bf16.mxu1 %v787_v1 }
  0x13   : > { %730 = vmatpush3.bf16.msra.mxu0 %v767_v25 }
  0x14   : > { %731 = vmatprep.subr.bf16.mxu0 %v787_v1 }
  0x15   : > { %716 = vmatpush3.bf16.msra.mxu1 %v762_v6 }
  0x16   : > { %717 = vmatprep.subr.bf16.mxu1 %v787_v1 }
  0x17   : > { %732 = vmatpush3.bf16.msra.mxu0 %v768_v26 }
  0x18   : > { %733 = vmatprep.subr.bf16.mxu0 %v787_v1 }
  0x19   : > { %718 = vmatpush3.bf16.msra.mxu1 %v763_v7 }
  0x1a   : > { %719 = vmatprep.subr.bf16.mxu1 %v787_v1 }
  0x1b   : > { %734 = vmatpush3.bf16.msra.mxu0 %v769_v27 }
  0x1c   : > { %735 = vmatprep.subr.bf16.mxu0 %v787_v1 }
  0x1d   : > { %720 = vmatpush3.bf16.msra.mxu1 %v764_v8 }
  0x1e   : > { %721 = vmatprep.subr.bf16.mxu1 %v787_v1 }
  0x1f   : > { %736 = vmatpush3.bf16.msra.mxu0 %v770_v28 }
  0x20   : > { %737 = vmatprep.subr.bf16.mxu0 %v787_v1 }
  0x21   : > { %722 = vmatpush3.bf16.msra.mxu1 %v765_v9 }
  0x22   : > { %723 = vmatprep.subr.bf16.mxu1 %v787_v1 }
  0x23   : > { %738 = vmatpush3.bf16.msra.mxu0 %v771_v29 }
  0x24   : > { %739 = vmatprep.subr.bf16.mxu0 %v787_v1 }
  0x25   : > { %724 = vmatpush3.bf16.msra.mxu1 %v766_v10 }
  0x27   : > { %740 = vmatpush3.bf16.msra.mxu0 %v772_v30 }
  0x28   : > { %741 = vmatprep.subr.bf16.mxu0 %v787_v1 }
  0x2b   : > { %742 = vmatpush3.bf16.msra.mxu0 %v773_v31 }
  0x2c   : > { %743 = vmatprep.subr.bf16.mxu0 %v787_v1 }
  0x2f   : > { %744 = vmatpush3.bf16.msra.mxu0 %v774_v32 }
  0xe4   : > { %v354_v12 = vpop.f32.mrb[0].mxu0 }
  0xe5   : > { %v355_v13 = vadd.f32 %v662_v11, %v354_v12  ;;  %v708_v14 = vpop.f32.mrb[1].mxu0 }
  0xe7   : > { %v358_v15 = vmul.f32 %v355_v13, %v355_v13 }
  0xe9   : > { %v359_v16 = vmul.f32 %v358_v15, %v355_v13 }
  0xeb   : > { %v360_v17 = vmul.f32 0.044715, %v359_v16 }
  0xed   : > { %v361_v18 = vadd.f32 %v360_v17, %v355_v13 }
  0xef   : > { %v362_v19 = vmul.f32 0.7978846, %v361_v18 }
  0xf1   : > { %775 = vtanh.f32 %v362_v19 }
  0xfb   : > { %v776_v20 = vpop.eup %775 }
  0xfc   : > { %v364_v21 = vadd.f32 1.0, %v776_v20 }
  0xfe   : > { %v365_v22 = vmul.f32 0.5, %v364_v21 }
 0x100   : > { %v366_v23 = vmul.f32 %v365_v22, %v355_v13 }
 0x102   : > { %v367_v24 = vpack.c.bf16 %v366_v23, %v366_v23 }
 0x104   : > { %726 = vmatmul.mubr.bf16.vlgmr.msra.gmra.mrb[0].mxu1 %v367_v24 }
 0x1d7   : > { %v473_v34 = vpop.f32.mrb[0].mxu1 }
 0x1d8   : > { %v474_v35 = vadd.f32 %v664_v33, %v473_v34  ;;  %v727_v36 = vpop.f32.mrb[1].mxu1 }
 0x1d9   : > { %v476_v37 = vpop.f32.mrb[2].mxu1 }
 0x1da   : > { %v479_v38 = vmul.f32 %v474_v35, %v474_v35  ;;  %v728_v39 = vpop.f32.mrb[3].mxu1 }
 0x1dc   : > { %v480_v40 = vmul.f32 %v479_v38, %v474_v35 }
 0x1de   : > { %v481_v41 = vmul.f32 0.044715, %v480_v40 }
 0x1e0   : > { %v482_v42 = vadd.f32 %v481_v41, %v474_v35 }
 0x1e2   : > { %v483_v43 = vmul.f32 0.7978846, %v482_v42 }
 0x1e4   : > { %777 = vtanh.f32 %v483_v43 }
 0x1ee   : > { %v778_v44 = vpop.eup %777 }
 0x1ef   : > { %v485_v45 = vadd.f32 1.0, %v778_v44 }
 0x1f1   : > { %v486_v46 = vmul.f32 0.5, %v485_v45 }
 0x1f3   : > { %v487_v47 = vmul.f32 %v486_v46, %v474_v35 }
 0x1f5   : > { %v488_v48 = vpack.c.bf16 %v487_v47, %v487_v47 }
 0x1f7   : > { %746 = vmatmul.mubr.bf16.vlgmr.msra.gmra.mrb[4].mxu0 %v488_v48 }
 0x2ca   : > { %v594_v50 = vpop.f32.mrb[4].mxu0 }
 0x2cb   : > { %v595_v51 = vadd.f32 %v673_v49, %v594_v50  ;;  %v747_v52 = vpop.f32.mrb[5].mxu0 }
 0x2cc   : > { %v597_v53 = vpop.f32.mrb[6].mxu0 }
 0x2cd   : > { %601 = vst.msk [vmem:[%s273_s9] sm:$0xff] %vm600_vm2, %v595_v51  ;;  %v748_v54 = vpop.f32.mrb[7].mxu0 }
 0x2ce PF: > { %s17_s24 = sadd.s32 1, %s785_s24  }
 0x2cf   : > { %p14_p4 = scmp.ge.s32.totalorder %s17_s24, 4  }
 0x2d1   :  { %16 = sbr.rel (!%p14_p4) target bundleno = 1 (0x1), region = 78 }

</bundles_post_ra>
